<compile_context>
chip_gen: v7x
topology: tpu7x:2x2x1
jax: 0.10.0
libtpu: 0.0.40
codegen_flags: <defaults>
</compile_context>

<pallas_src>
import functools

import jax
import jax.numpy as jnp
from jax.experimental import pallas as pl
from jax.experimental.pallas import tpu as pltpu

HIGHEST = jax.lax.Precision.HIGHEST


def _round_up(x, m):
    return (x + m - 1) // m * m


def _vmem_limit_bytes():
    """Scoped VMEM limit: half the physical capacity, capped at 96 MiB."""
    try:
        cap = int(pltpu.get_tpu_info().vmem_capacity_bytes)
    except Exception:
        cap = 128 * 1024 * 1024
    return int(min(96 * 1024 * 1024, cap // 2))


# --------------------------------------------------------------------------- #
# Kernel 1: fused (value_proj o output_proj), all heads in one matmul.         #
# --------------------------------------------------------------------------- #
def _fuse_values_kernel(feat_ref, w_ref, b_ref, vw_ref, *, n_heads, d_model):
    # feat_ref: (1, THW, D) bf16   w_ref: (D, n_heads*D) bf16   b_ref: (1, n_heads*D) f32
    res = (jnp.dot(feat_ref[0], w_ref[...], preferred_element_type=jnp.float32)
           + b_ref[...])                                   # [THW, n_heads*D] f32
    res = res.astype(jnp.bfloat16)
    # Split per head into the [B, n_heads, HW, D] output layout (static lane slices).
    for hd in range(n_heads):
        vw_ref[0, hd] = res[:, hd * d_model:(hd + 1) * d_model]


# --------------------------------------------------------------------------- #
# Kernel 2: per (batch, head, q-tile) separable bilinear gather.                #
# --------------------------------------------------------------------------- #
def _deform_gather_kernel(sx_ref, sy_ref, attn_ref, vw_ref, o_ref,
                          *, n_points, h, w, d_model, chunk_w):
    f32 = jnp.float32
    sx = sx_ref[0, 0]                    # [TQ, P]  pixel-space sampling x
    sy = sy_ref[0, 0]                    # [TQ, P]  pixel-space sampling y
    attn = attn_ref[0, 0]                # [TQ, P]  softmaxed attention weights
    tq = sx.shape[0]
    P = n_points

    # Bilinear corner indices / weights (f32 elementwise, VPU).
    x0f = jnp.floor(sx)
    y0f = jnp.floor(sy)
    wx1 = sx - x0f
    wx0 = 1.0 - wx1
    wy1 = sy - y0f
    wy0 = 1.0 - wy1
    x0 = x0f.astype(jnp.int32)
    y0 = y0f.astype(jnp.int32)
    x1 = jnp.minimum(x0 + 1, w - 1)
    y1 = jnp.minimum(y0 + 1, h - 1)

    y_iota = jax.lax.broadcasted_iota(jnp.int32, (tq, h), 1)

    # Per-point y one-hot rows with the y bilinear weight folded in (bf16 for MXU).
    oy = []
    for p in range(P):
        o = (wy0[:, p:p + 1] * (y_iota == y0[:, p:p + 1]).astype(f32)
             + wy1[:, p:p + 1] * (y_iota == y1[:, p:p + 1]).astype(f32))
        oy.append(o.astype(jnp.bfloat16))                   # [TQ, H]

    acc = jnp.zeros((tq, d_model), f32)
    n_chunks = -(-w // chunk_w)
    for c in range(n_chunks):
        col0 = c * chunk_w
        cw = min(chunk_w, w - col0)
        # Strip-mine the W*D lane axis: one ~512-lane strip of the per-head
        # fused values, loaded once per chunk and reused for all points.
        vw_c = vw_ref[0, 0, :, col0 * d_model:(col0 + cw) * d_model]  # [H, cw*D] bf16
        for p in range(P):
            # y contraction on the MXU with fat N = cw*D.
            t = jnp.dot(oy[p], vw_c, preferred_element_type=f32)     # [TQ, cw*D]
            a_p = attn[:, p:p + 1]
            wx0_p = wx0[:, p:p + 1]
            wx1_p = wx1[:, p:p + 1]
            x0_p = x0[:, p:p + 1]
            x1_p = x1[:, p:p + 1]
            # x bilinear + attention weights applied column-by-column in f32 on
            # the VPU, reducing over x as we go (no stacked-identity matmul,
            # no [TQ, W*D] weight temporaries).
            for xi in range(cw):
                xg = col0 + xi
                colw = a_p * (wx0_p * (x0_p == xg).astype(f32)
                              + wx1_p * (x1_p == xg).astype(f32))     # [TQ, 1]
                acc = acc + colw * t[:, xi * d_model:(xi + 1) * d_model]

    o_ref[0, 0] = acc.astype(o_ref.dtype)


# --------------------------------------------------------------------------- #
# Wrapper                                                                      #
# --------------------------------------------------------------------------- #
def deformable_attention(query, reference_points, input_flatten, spatial_shape,
                         params, n_heads, n_points):
    B, Q, D = query.shape
    HW = input_flatten.shape[1]
    h, w = int(spatial_shape[0]), int(spatial_shape[1])
    assert h * w == HW
    assert D % n_heads == 0
    P = n_points
    dh = D // n_heads
    f32 = jnp.float32
    vmem_limit = _vmem_limit_bytes()

    # ---- fold value_proj and output_proj into one per-head fused weight ------
    w_val = jnp.asarray(params["w_val"], f32)            # [D, D] (out, in)
    b_val = jnp.asarray(params["b_val"], f32)            # [D]
    w_out = jnp.asarray(params["w_out"], f32)            # [D, D]
    b_out = jnp.asarray(params["b_out"], f32)            # [D]

    w_val_heads = w_val.reshape(n_heads, dh, D)          # [h, k, i]
    w_out_heads = w_out.reshape(D, n_heads, dh)          # [j, h, k]
    w_fused = jnp.einsum('hki,jhk->hij', w_val_heads, w_out_heads,
                         precision=HIGHEST)              # [H, D, D]
    # All heads concatenated along the output lane axis: [D, n_heads*D].
    w_all = w_fused.transpose(1, 0, 2).reshape(D, n_heads * D).astype(jnp.bfloat16)
    b_all = jnp.einsum('hk,jhk->hj', b_val.reshape(n_heads, dh), w_out_heads,
                       precision=HIGHEST).reshape(1, n_heads * D).astype(f32)

    # ---- hoisted sampling-offset / attention projections (tiny XLA ops) ------
    w_off = jnp.asarray(params["w_off"], f32)
    b_off = jnp.asarray(params["b_off"], f32)
    w_attn = jnp.asarray(params["w_attn"], f32)
    b_attn = jnp.asarray(params["b_attn"], f32)

    offs = (jnp.matmul(query, w_off.T, precision=HIGHEST)
            + b_off).reshape(B, Q, n_heads, P, 2)
    logits = (jnp.matmul(query, w_attn.T, precision=HIGHEST)
              + b_attn).reshape(B, Q, n_heads, P)
    attn = jax.nn.softmax(logits, axis=-1)

    loc = jnp.clip(reference_points[:, :, None, None, :] + offs, 0.0, 1.0)
    sx = loc[..., 0] * float(w - 1)                      # [B, Q, H, P]
    sy = loc[..., 1] * float(h - 1)

    # [B, n_heads, Q, P] so kernel 2 can slice per head via BlockSpec.
    sx = jnp.transpose(sx, (0, 2, 1, 3))
    sy = jnp.transpose(sy, (0, 2, 1, 3))
    attn = jnp.transpose(attn, (0, 2, 1, 3))

    # ---- kernel 1: fused values, grid (B, HW tiles) — one feat read total ----
    feat_bf16 = input_flatten.astype(jnp.bfloat16)       # pre-cast: halves HBM reads
    thw = min(512, _round_up(HW, 8))
    hwp = _round_up(HW, thw)                             # pad HW to a multiple of thw
    if hwp != HW:
        feat_bf16 = jnp.pad(feat_bf16, ((0, 0), (0, hwp - HW), (0, 0)))

    vw_all = pl.pallas_call(
        functools.partial(_fuse_values_kernel, n_heads=n_heads, d_model=D),
        out_shape=jax.ShapeDtypeStruct((B, n_heads, hwp, D), jnp.bfloat16),
        grid_spec=pltpu.PrefetchScalarGridSpec(
            num_scalar_prefetch=0,
            grid=(B, hwp // thw),
            in_specs=[
                pl.BlockSpec((1, thw, D), lambda b, t: (b, t, 0)),
                pl.BlockSpec((D, n_heads * D), lambda b, t: (0, 0)),
                pl.BlockSpec((1, n_heads * D), lambda b, t: (0, 0)),
            ],
            out_specs=pl.BlockSpec((1, n_heads, thw, D), lambda b, t: (b, 0, t, 0)),
        ),
        compiler_params=pltpu.CompilerParams(
            dimension_semantics=("parallel", "parallel"),
            vmem_limit_bytes=vmem_limit),
    )(feat_bf16, w_all, b_all)

    if hwp != HW:
        # TODO(synk): avoid this slice copy for awkward HW by padding h instead.
        vw_all = vw_all[:, :, :HW, :]
    # Free row-major reshape: rows = y, lanes = x*D + d.
    vw_all = vw_all.reshape(B, n_heads, h, w * D)

    # ---- pad queries to a multiple of the Q tile ------------------------------
    tq = min(64, _round_up(Q, 8))
    qp = _round_up(Q, tq)
    if qp != Q:
        pad = ((0, 0), (0, 0), (0, qp - Q), (0, 0))
        sx = jnp.pad(sx, pad)       # padded rows: loc (0,0) / attn 0 -> zero output
        sy = jnp.pad(sy, pad)
        attn = jnp.pad(attn, pad)

    # ---- kernel 2: per-head gather, vw resident across the inner q-tile axis --
    chunk_w = max(1, min(w, 512 // D))
    kernel = functools.partial(_deform_gather_kernel, n_points=P, h=h, w=w,
                               d_model=D, chunk_w=chunk_w)

    partial_out = pl.pallas_call(
        kernel,
        out_shape=jax.ShapeDtypeStruct((B, n_heads, qp, D), f32),
        grid_spec=pltpu.PrefetchScalarGridSpec(
            num_scalar_prefetch=0,
            grid=(B, n_heads, qp // tq),          # q-tiles innermost: vw reused
            in_specs=[
                pl.BlockSpec((1, 1, tq, P), lambda b, hd, qi: (b, hd, qi, 0)),     # sx
                pl.BlockSpec((1, 1, tq, P), lambda b, hd, qi: (b, hd, qi, 0)),     # sy
                pl.BlockSpec((1, 1, tq, P), lambda b, hd, qi: (b, hd, qi, 0)),     # attn
                pl.BlockSpec((1, 1, h, w * D), lambda b, hd, qi: (b, hd, 0, 0)),   # vw
            ],
            out_specs=pl.BlockSpec((1, 1, tq, D), lambda b, hd, qi: (b, hd, qi, 0)),
        ),
        compiler_params=pltpu.CompilerParams(
            dimension_semantics=("parallel", "parallel", "parallel"),
            vmem_limit_bytes=vmem_limit),
    )(sx, sy, attn, vw_all)

    # Tiny XLA head reduction + output bias (output proj already fused into vw).
    out = jnp.sum(partial_out, axis=1) + b_out[None, None, :]
    return out[:, :Q, :]


# --------------------------------------------------------------------------- #
# Pure-JAX reference (mirror of the PyTorch forward), for verification only.   #
# --------------------------------------------------------------------------- #
def reference_forward(query, reference_points, input_flatten, spatial_shape,
                      params, n_heads, n_points):
    B, Q, D = query.shape
    h, w = int(spatial_shape[0]), int(spatial_shape[1])
    HW = h * w
    d_head = D // n_heads

    offsets = (jnp.matmul(query, params["w_off"].T, precision=HIGHEST)
               + params["b_off"]).reshape(B, Q, n_heads, n_points, 2)
    weights = (jnp.matmul(query, params["w_attn"].T, precision=HIGHEST)
               + params["b_attn"]).reshape(B, Q, n_heads, n_points)
    weights = jax.nn.softmax(weights, axis=-1)
    values = jnp.matmul(input_flatten, params["w_val"].T, precision=HIGHEST) + params["b_val"]
    values_heads = values.reshape(B, HW, n_heads, d_head)

    ref = reference_points[:, :, None, None, :]
    loc = jnp.clip(ref + offsets, 0.0, 1.0)
    sx = loc[..., 0] * (w - 1)
    sy = loc[..., 1] * (h - 1)
    x0 = jnp.floor(sx).astype(jnp.int32)
    y0 = jnp.floor(sy).astype(jnp.int32)
    x1 = jnp.clip(x0 + 1, 0, w - 1)
    y1 = jnp.clip(y0 + 1, 0, h - 1)
    x0 = jnp.clip(x0, 0, w - 1)
    y0 = jnp.clip(y0, 0, h - 1)
    wx1 = sx - x0.astype(jnp.float32)
    wx0 = 1.0 - wx1
    wy1 = sy - y0.astype(jnp.float32)
    wy0 = 1.0 - wy1
    idx00 = y0 * w + x0
    idx01 = y1 * w + x0
    idx10 = y0 * w + x1
    idx11 = y1 * w + x1

    b_ix = jnp.arange(B)[:, None, None, None]
    h_ix = jnp.arange(n_heads)[None, None, :, None]

    def gather(idx):
        return values_heads[b_ix, idx, h_ix]   # [B, Q, H, P, d_head]

    result = (gather(idx00) * (wx0 * wy0)[..., None]
              + gather(idx01) * (wx0 * wy1)[..., None]
              + gather(idx10) * (wx1 * wy0)[..., None]
              + gather(idx11) * (wx1 * wy1)[..., None])
    out = jnp.sum(result * weights[..., None], axis=3).reshape(B, Q, D)
    return jnp.matmul(out, params["w_out"].T, precision=HIGHEST) + params["b_out"]


def init_params(key, d_model, n_heads, n_points):
    """Deterministic parameter init matching the module's shapes.

    Note: the PyTorch _reset_parameters zeroes sampling_offsets / attention_weights;
    here we use small deterministic random values instead so the sampling path is
    actually exercised.
    """
    HP = n_heads * n_points
    k1, k2, k3, k4 = jax.random.split(key, 4)
    xavier_bound = (6.0 / (d_model + d_model)) ** 0.5
    return {
        "w_off": 0.1 * jax.random.normal(k1, (HP * 2, d_model), jnp.float32),
        "b_off": jnp.zeros((HP * 2,), jnp.float32),
        "w_attn": 0.1 * jax.random.normal(k2, (HP, d_model), jnp.float32),
        "b_attn": jnp.zeros((HP,), jnp.float32),
        "w_val": jax.random.uniform(k3, (d_model, d_model), jnp.float32,
                                    -xavier_bound, xavier_bound),
        "b_val": jnp.zeros((d_model,), jnp.float32),
        "w_out": jax.random.uniform(k4, (d_model, d_model), jnp.float32,
                                    -xavier_bound, xavier_bound),
        "b_out": jnp.zeros((d_model,), jnp.float32),
    }


if __name__ == "__main__":
    B, Q, D = 2, 8, 32
    n_heads, n_points = 4, 2
    h, w = 8, 8
    HW = h * w

    key = jax.random.PRNGKey(0)
    k_q, k_ref, k_feat, k_par = jax.random.split(key, 4)

    query = jax.random.normal(k_q, (B, Q, D), jnp.float32)
    reference_points = jax.random.uniform(k_ref, (B, Q, 2), jnp.float32)
    input_flatten = jax.random.normal(k_feat, (B, HW, D), jnp.float32)
    params = init_params(k_par, D, n_heads, n_points)

    out = deformable_attention(query, reference_points, input_flatten, (h, w),
                               params, n_heads, n_points)
    out = jax.block_until_ready(out)

    ref = reference_forward(query, reference_points, input_flatten, (h, w),
                            params, n_heads, n_points)
    assert out.shape == (B, Q, D)
    assert jnp.allclose(out, ref, rtol=2e-2, atol=2e-2), (
        f"max abs diff {jnp.max(jnp.abs(out - ref))}")

    print("KERNEL_OK")
</pallas_src>

<mosaic_0001>
module attributes {stable_mosaic.version = 11 : i64} {
  func.func @_fuse_values_kernel(%arg0: i32, %arg1: i32, %arg2: memref<1x64x32xbf16, #tpu.memory_space<vmem>>, %arg3: memref<32x128xbf16, #tpu.memory_space<vmem>>, %arg4: memref<1x128xf32, #tpu.memory_space<vmem>>, %arg5: memref<1x4x64x32xbf16, #tpu.memory_space<vmem>>) attributes {dimension_semantics = [#tpu.dimension_semantics<parallel>, #tpu.dimension_semantics<parallel>], iteration_bounds = array<i64: 2, 1>, scalar_prefetch = 0 : i64, scratch_operands = 0 : i64, tpu.core_type = #tpu.core_type<tc>, window_params = [{transform_indices = @transform_0, window_bounds = array<i64: 1, 64, 32>}, {pipeline_mode = #tpu.pipeline_mode<synchronous>, transform_indices = @transform_1, window_bounds = array<i64: 32, 128>}, {pipeline_mode = #tpu.pipeline_mode<synchronous>, transform_indices = @transform_2, window_bounds = array<i64: 1, 128>}, {transform_indices = @transform_3, window_bounds = array<i64: 1, 4, 64, 32>}]} {
    %c0 = arith.constant 0 : index
    %c0_0 = arith.constant 0 : index
    %c0_1 = arith.constant 0 : index
    %0 = vector.load %arg2[%c0, %c0_0, %c0_1] : memref<1x64x32xbf16, #tpu.memory_space<vmem>>, vector<1x64x32xbf16>
    %1 = vector.shape_cast %0 : vector<1x64x32xbf16> to vector<64x32xbf16>
    %c0_2 = arith.constant 0 : index
    %c0_3 = arith.constant 0 : index
    %2 = vector.load %arg3[%c0_2, %c0_3] : memref<32x128xbf16, #tpu.memory_space<vmem>>, vector<32x128xbf16>
    %cst = arith.constant dense<0.000000e+00> : vector<64x128xf32>
    %3 = tpu.matmul %1, %2, %cst {dimension_numbers = #tpu.dot_dimension_numbers<[1], [0], [0], [1], [0, 0, 1, 1], [], []>} : vector<64x32xbf16>, vector<32x128xbf16>, vector<64x128xf32> -> vector<64x128xf32>
    %c0_4 = arith.constant 0 : index
    %c0_5 = arith.constant 0 : index
    %4 = vector.load %arg4[%c0_4, %c0_5] : memref<1x128xf32, #tpu.memory_space<vmem>>, vector<1x128xf32>
    %5 = vector.broadcast %4 : vector<1x128xf32> to vector<64x128xf32>
    %6 = arith.addf %3, %5 : vector<64x128xf32>
    %7 = arith.truncf %6 : vector<64x128xf32> to vector<64x128xbf16>
    %8 = vector.extract_strided_slice %7 {offsets = [0, 0], sizes = [64, 32], strides = [1, 1]} : vector<64x128xbf16> to vector<64x32xbf16>
    %c0_6 = arith.constant 0 : index
    %c0_7 = arith.constant 0 : index
    %c0_8 = arith.constant 0 : index
    %c0_9 = arith.constant 0 : index
    %9 = vector.load %arg5[%c0_6, %c0_7, %c0_8, %c0_9] : memref<1x4x64x32xbf16, #tpu.memory_space<vmem>>, vector<1x1x64x32xbf16>
    %10 = vector.shape_cast %9 : vector<1x1x64x32xbf16> to vector<64x32xbf16>
    %11 = vector.shape_cast %8 : vector<64x32xbf16> to vector<1x1x64x32xbf16>
    tpu.vector_store %arg5[%c0_6, %c0_7, %c0_8, %c0_9], %11 {strides = array<i32>} : memref<1x4x64x32xbf16, #tpu.memory_space<vmem>>, vector<1x1x64x32xbf16>,
    %12 = vector.extract_strided_slice %7 {offsets = [0, 32], sizes = [64, 32], strides = [1, 1]} : vector<64x128xbf16> to vector<64x32xbf16>
    %c0_10 = arith.constant 0 : index
    %c1 = arith.constant 1 : index
    %c0_11 = arith.constant 0 : index
    %c0_12 = arith.constant 0 : index
    %13 = vector.load %arg5[%c0_10, %c1, %c0_11, %c0_12] : memref<1x4x64x32xbf16, #tpu.memory_space<vmem>>, vector<1x1x64x32xbf16>
    %14 = vector.shape_cast %13 : vector<1x1x64x32xbf16> to vector<64x32xbf16>
    %15 = vector.shape_cast %12 : vector<64x32xbf16> to vector<1x1x64x32xbf16>
    tpu.vector_store %arg5[%c0_10, %c1, %c0_11, %c0_12], %15 {strides = array<i32>} : memref<1x4x64x32xbf16, #tpu.memory_space<vmem>>, vector<1x1x64x32xbf16>,
    %16 = vector.extract_strided_slice %7 {offsets = [0, 64], sizes = [64, 32], strides = [1, 1]} : vector<64x128xbf16> to vector<64x32xbf16>
    %c0_13 = arith.constant 0 : index
    %c2 = arith.constant 2 : index
    %c0_14 = arith.constant 0 : index
    %c0_15 = arith.constant 0 : index
    %17 = vector.load %arg5[%c0_13, %c2, %c0_14, %c0_15] : memref<1x4x64x32xbf16, #tpu.memory_space<vmem>>, vector<1x1x64x32xbf16>
    %18 = vector.shape_cast %17 : vector<1x1x64x32xbf16> to vector<64x32xbf16>
    %19 = vector.shape_cast %16 : vector<64x32xbf16> to vector<1x1x64x32xbf16>
    tpu.vector_store %arg5[%c0_13, %c2, %c0_14, %c0_15], %19 {strides = array<i32>} : memref<1x4x64x32xbf16, #tpu.memory_space<vmem>>, vector<1x1x64x32xbf16>,
    %20 = vector.extract_strided_slice %7 {offsets = [0, 96], sizes = [64, 32], strides = [1, 1]} : vector<64x128xbf16> to vector<64x32xbf16>
    %c0_16 = arith.constant 0 : index
    %c3 = arith.constant 3 : index
    %c0_17 = arith.constant 0 : index
    %c0_18 = arith.constant 0 : index
    %21 = vector.load %arg5[%c0_16, %c3, %c0_17, %c0_18] : memref<1x4x64x32xbf16, #tpu.memory_space<vmem>>, vector<1x1x64x32xbf16>
    %22 = vector.shape_cast %21 : vector<1x1x64x32xbf16> to vector<64x32xbf16>
    %23 = vector.shape_cast %20 : vector<64x32xbf16> to vector<1x1x64x32xbf16>
    tpu.vector_store %arg5[%c0_16, %c3, %c0_17, %c0_18], %23 {strides = array<i32>} : memref<1x4x64x32xbf16, #tpu.memory_space<vmem>>, vector<1x1x64x32xbf16>,
    return
  }
  func.func @transform_0(%arg0: i32, %arg1: i32) -> (i32, i32, i32) {
    %c0_i32 = arith.constant 0 : i32
    %c0_i32_0 = arith.constant 0 : i32
    return %arg0, %arg1, %c0_i32 : i32, i32, i32
  }
  func.func @transform_1(%arg0: i32, %arg1: i32) -> (i32, i32) {
    %c0_i32 = arith.constant 0 : i32
    %c0_i32_0 = arith.constant 0 : i32
    %c0_i32_1 = arith.constant 0 : i32
    return %c0_i32, %c0_i32_0 : i32, i32
  }
  func.func @transform_2(%arg0: i32, %arg1: i32) -> (i32, i32) {
    %c0_i32 = arith.constant 0 : i32
    %c0_i32_0 = arith.constant 0 : i32
    %c0_i32_1 = arith.constant 0 : i32
    return %c0_i32, %c0_i32_0 : i32, i32
  }
  func.func @transform_3(%arg0: i32, %arg1: i32) -> (i32, i32, i32, i32) {
    %c0_i32 = arith.constant 0 : i32
    %c0_i32_0 = arith.constant 0 : i32
    %c0_i32_1 = arith.constant 0 : i32
    return %arg0, %c0_i32, %arg1, %c0_i32_0 : i32, i32, i32, i32
  }
}

</mosaic_0001>

<bundles_post_ra>
// kernel: tpu_custom_call.1
= control target key start
LH: loop header
LB: loop body
LE: loop exit
PB: predicated region body
PF: predicated region fallthrough
CT: control target
= control target key end

     0   :  { %8 = vsyncpa [#allocation3], 0  ;;  %s1369_s0 = inlined_call_operand.hbm [shape: bf16[2,64,32], index: 0, kind: input, shape index: {}]   ;;  %s1370_s1 = inlined_call_operand.hbm [shape: bf16[32,128], index: 1, kind: input, shape index: {}]   ;;  %s1371_s2 = inlined_call_operand.hbm [shape: f32[1,128], index: 2, kind: input, shape index: {}]   ;;  %s1372_s3 = inlined_call_operand.hbm [shape: bf16[2,4,64,32], index: 3, kind: output, shape index: {}]  }
   0x1   :  { %10 = vsyncpa [#allocation3 + $0x1], 0 }
   0x2   :  { %11 = vsyncpa [#allocation6], 0 }
   0x3   :  { %12 = vsyncpa [#allocation4], 0 }
   0x4   :  { %14 = vsyncpa [#allocation4 + $0x1], 0  ;;  %s1021_s12 = smov 0   ;;  %s1023_s13 = smov 0  }
   0x5   :  { %s1025_s14 = smov 0   ;;  %s1027_s15 = smov 0  }
   0x6   :  { %s1029_s16 = smov 0   ;;  %s1031_s17 = smov 0  }
   0x7 LB: > { %s628_s18 = sadd.s32 4294967295, %s989_s17   ;;  %s629_s19 = sadd.s32 4294967294, %s989_s17   ;;  %s989_s17 = sphi %s1031_s17, %s20_s17   ;;  %s985_s16 = sphi %s1029_s16, %s1394_s16   ;;  %s981_s15 = sphi %s1027_s15, %s1393_s15   ;;  %s977_s14 = sphi %s1025_s14, %s1392_s14   ;;  %s973_s13 = sphi %s1023_s13, %s1391_s13   ;;  %s969_s12 = sphi %s1021_s12, %s1390_s12  }
   0x8   : > { %p54_p0 = scmp.ne.s32.totalorder %s973_s13, %s969_s12  ;;  %p1055_p1 = scmp.eq.s32.totalorder %s628_s18, 0 }
   0x9   : > { %p1059_p2 = scmp.eq.s32.totalorder %s628_s18, 1  ;;  %p128_p3 = scmp.eq.s32.totalorder %s629_s19, 1 }
   0xa   : > { %s1377_s20 = scalar_select %p1055_p1, 1, 0 }
   0xb   : > { %p1065_p4 = por %p1055_p1, %p54_p0  ;;  %p630_p5 = scmp.ge.s32.totalorder %s989_s17, 1 }
   0xc   : > { %p1070_p6 = por %p128_p3, %p54_p0  ;;  %p135_p7 = scmp.lt.s32.totalorder %s989_s17, 3 }
   0xd   : > { %s1379_s22 = scalar_select %p1065_p4, 1, 0 }
   0xe   : > { %s1380_s23 = scalar_select %p1070_p6, 1, 0 }
   0xf   : > { %p1075_p8 = pnand %p630_p5, %p135_p7  ;;  %s991_s25 = smov [#allocation5]  }
  0x10   : > { %s147_s26 = sshll.u32 %s991_s25, 4  ;;  %s992_s28 = smov [#allocation7]   ;;  %s1079_s26 = int_to_ptr.vmem [resolvable:$true] %s147_s26 }
  0x11   : > { %p734_p9 = pneg %p1075_p8  ;;  %s161_s29 = sshll.u32 %s992_s28, 4  ;;  %s1090_s29 = int_to_ptr.vmem [resolvable:$true] %s161_s29 }
  0x12   : > { %s817_s5 = scalar_lea.hbm %s1370_s1, 256 }
  0x13   : > { %p1086_p11 = pnand %p734_p9, %p1055_p1  ;;  %p818_p12 = scmp.ne.s32.totalorder %s1370_s1, %s817_s5 }
  0x14   : > { %p824_p5 = scmp.lt.u32.totalorder %s817_s5, %s1370_s1 }
  0x15   : > { %p819_p13 = pneg %p1086_p11 }
  0x17   : > { %p820_p0 = pnand %p819_p13, %p818_p12 }
  0x19   : > { %p821_p3 = pneg %p820_p0 }
  0x1b   : > { %p826_p7 = pnand %p824_p5, %p821_p3 }
  0x1d   : > { %829 = shalt.err (!%p826_p7)
}
  0x1e   : > { %s830_s10 = scalar_lea.vmem %s1079_s26, 256  ;;  %p838_p1 = scmp.lt.s32.totalorder %s1079_s26, %s1079_s26 }
  0x1f   : > { %p831_p9 = scmp.ne.s32.totalorder %s1079_s26, %s830_s10  ;;  %p839_p12 = scmp.lt.s32.totalorder %s830_s10, %s830_s10 }
  0x21   : > { %p833_p10 = pnand %p831_p9, %p819_p13  ;;  %p840_p0 = por %p839_p12, %p838_p1 }
  0x23   : > { %p834_p6 = pneg %p833_p10 }
  0x25   : > { %p841_p4 = pnand %p840_p0, %p834_p6 }
  0x27   : > { %844 = shalt.err (!%p841_p4)
}
  0x28   : > { %s993_s11 = smov 64   ;;  %s994_s18 = smov 4  }
  0x29   : > { %737 = dma.hbm_to_vmem [thread:$0]  (!%p1086_p11), %s1370_s1, 256, %s1079_s26, [#allocation6], %s993_s11, %s993_s11, %s994_s18  }
  0x2a   : > { %s845_s4 = scalar_lea.hbm %s1371_s2, 16 }
  0x2b   : > { %p846_p1 = scmp.ne.s32.totalorder %s1371_s2, %s845_s4  ;;  %p852_p10 = scmp.lt.u32.totalorder %s845_s4, %s1371_s2 }
  0x2d   : > { %p848_p4 = pnand %p846_p1, %p819_p13 }
  0x2f   : > { %p849_p6 = pneg %p848_p4 }
  0x31   : > { %p854_p3 = pnand %p852_p10, %p849_p6 }
  0x33   : > { %857 = shalt.err (!%p854_p3)
}
  0x34   : > { %s858_s26 = scalar_lea.vmem %s1090_s29, 16  ;;  %s865_s9 = scalar_lea.vmem %s1090_s29, 32 }
  0x35   : > { %p859_p5 = scmp.ne.s32.totalorder %s1090_s29, %s858_s26  ;;  %p866_p12 = scmp.lt.s32.totalorder %s1090_s29, %s1090_s29 }
  0x36   : > { %p867_p0 = scmp.lt.s32.totalorder %s865_s9, %s858_s26 }
  0x37   : > { %p861_p7 = pnand %p859_p5, %p819_p13 }
  0x38   : > { %p868_p1 = por %p867_p0, %p866_p12 }
  0x39   : > { %p862_p9 = pneg %p861_p7 }
  0x3b   : > { %p869_p4 = pnand %p868_p1, %p862_p9 }
  0x3d   : > { %872 = shalt.err (!%p869_p4)
}
  0x3e   : > { %740 = dma.hbm_to_vmem [thread:$0]  (!%p1086_p11), %s1371_s2, 16, %s1090_s29, [#allocation6]  }
  0x3f   : > { %s32_s25 = sadd.s32 1, %s985_s16  ;;  %s41_s28 = sadd.s32 1, %s977_s14 }
  0x40   : > { %p34_p13 = scmp.ge.s32.totalorder %s32_s25, 2  ;;  %p48_p6 = scmp.ne.s32.totalorder %s977_s14, %s973_s13 }
  0x41   : > { %p49_p10 = scmp.eq.s32.totalorder %s989_s17, 0  ;;  %p751_p3 = scmp.lt.s32.totalorder %s989_s17, 2 }
  0x42   : > { %s1396_s25 = smov (%p34_p13, %s32_s25), 0  ;;  %p1158_p7 = por %p1059_p2, %p48_p6 }
  0x43   : > { %p50_p5 = por %p49_p10, %p48_p6  ;;  %s36_s30 = ssub.s32 %s985_s16, %s1396_s25 }
  0x44   : > { %s1383_s27 = scalar_select %p1158_p7, 1, 0 }
  0x45   : > { %s172_s4 = sand.u32 1, %s977_s14   ;;  %p39_p9 = scmp.eq.s32.totalorder %s36_s30, 0 }
  0x46   : > { %s634_s29 = sshll.u32 %s172_s4, 5  ;;  %s690_s5 = sshll.u32 %s985_s16, 9 }
  0x47   : > { %s1167_s6 = scalar_select %p39_p9, %s977_s14, %s41_s28  }
  0x48   : > { %s1172_s26 = scalar_lea.hbm %s1369_s0, %s690_s5  ;;  %s176_s21 = scalar_lea.vmem [#allocation2], %s634_s29 }
  0x49   : > { %s185_s9 = sshll.u32 %s176_s21, 4  ;;  %p1176_p2 = pnand %p751_p3, %p50_p5  ;;  %s1180_s9 = int_to_ptr.vmem [resolvable:$true] %s185_s9 }
  0x4a   : > { %s1182_s19 = scalar_lea.sflag [#allocation3], %s172_s4  ;;  %s873_s28 = scalar_lea.hbm %s1172_s26, 512 }
  0x4b   : > { %p874_p11 = scmp.ne.s32.totalorder %s1172_s26, %s873_s28  ;;  %p875_p12 = pneg %p1176_p2 }
  0x4c   : > { %s878_s5 = scalar_lea.hbm %s1369_s0, 1024  ;;  %p879_p4 = scmp.lt.u32.totalorder %s1172_s26, %s1369_s0 }
  0x4d   : > { %p876_p0 = pnand %p875_p12, %p874_p11  ;;  %p880_p13 = scmp.lt.u32.totalorder %s878_s5, %s873_s28 }
  0x4e   : > { %p882_p10 = scmp.lt.u32.totalorder %s873_s28, %s1172_s26 }
  0x4f   : > { %p877_p1 = pneg %p876_p0  ;;  %p881_p6 = por %p880_p13, %p879_p4 }
  0x51   : > { %p883_p3 = por %p882_p10, %p881_p6 }
  0x53   : > { %p884_p5 = pnand %p883_p3, %p877_p1 }
  0x55   : > { %887 = shalt.err (!%p884_p5)
}
  0x56   : > { %s888_s4 = scalar_lea.vmem %s1180_s9, 512  ;;  %s995_s21 = smov [#allocation2]  }
  0x57   : > { %p889_p9 = scmp.ne.s32.totalorder %s1180_s9, %s888_s4  ;;  %s893_s30 = sshll.u32 %s995_s21, 4  ;;  %s894_s30 = int_to_ptr.vmem [resolvable:$false] %s893_s30 }
  0x58   : > { %s895_s29 = scalar_lea.vmem %s894_s30, 1024  ;;  %p896_p7 = scmp.lt.s32.totalorder %s1180_s9, %s894_s30 }
  0x59   : > { %p891_p11 = pnand %p889_p9, %p875_p12  ;;  %p897_p4 = scmp.lt.s32.totalorder %s895_s29, %s888_s4 }
  0x5b   : > { %p892_p0 = pneg %p891_p11  ;;  %p898_p13 = por %p897_p4, %p896_p7 }
  0x5d   : > { %p899_p6 = pnand %p898_p13, %p892_p0 }
  0x5f   : > { %902 = shalt.err (!%p899_p6)
}
  0x60   : > { %744 = dma.hbm_to_vmem [thread:$0]  (!%p1176_p2), %s1172_s26, 512, %s1180_s9, %s1182_s19, %s993_s11, %s993_s11, %s994_s18  }
  0x61   : > { %197 = sbr.rel (%p1075_p8) target bundleno = 507 (0x1fb), region = 32  ;;  %s1216_s28 = sand.u32 (!%p1075_p8), 1, %s973_s13  }
  0x62   : > { %s638_s5 = sshll.u32 (!%p1075_p8), %s1216_s28, 5  ;;  %s200_s7 = scalar_lea.sflag (!%p1075_p8), [#allocation3], %s1216_s28 }
  0x63   : > { %s203_s8 = scalar_lea.vmem (!%p1075_p8), [#allocation2], %s638_s5  ;;  %p1385_p7 = scmp.ne.s32.totalorder (!%p1075_p8), %s1379_s22, 0 }
  0x68   : > { %956 = dma.done.wait (%p1385_p7), %s200_s7, 512  }
  0x69   : > { %958 = vsyncadd (%p1385_p7), %s200_s7, 4294966784  ;;  %p1386_p12 = scmp.ne.s32.totalorder %s1377_s20, 0 }
  0x6b   : > { %960 = dma.done.wait (%p1386_p12), [#allocation6], 272  }
  0x6c   : > { %962 = vsyncadd (%p1386_p12), [#allocation6], 4294967024  ;;  %v811_v0 = vld [vmem:[#allocation5] sm:$0xff]   ;;  %v812_v1 = vld [vmem:[#allocation5 + $0x8] sm:$0xff]   ;;  %vm288_vm0 = vcmask 261120   ;;  %s641_s20 = sshll.u32 %s1216_s28, 7 }
  0x6d   : > { %706 = vmatprep.subr.bf16.mxu0 %v811_v0  ;;  %718 = vmatprep.subr.bf16.mxu1 %v811_v0  ;;  %v813_v2 = vld [vmem:[%s203_s8] sm:$0xff]   ;;  %v814_v3 = vld [vmem:[%s203_s8 + $0x10] sm:$0xff]   ;;  %v815_v4 = vld [vmem:[%s203_s8 + $0x8] sm:$0xff]   ;;  %vm398_vm1 = vcmask 257024   ;;  %s1229_s22 = scalar_lea.vmem [#allocation8], %s641_s20  ;;  %s996_s24 = smov 96  }
  0x6e   : > { %707 = vmatpush3.bf16.msra.mxu0 %v811_v0  ;;  %720 = vmatpush3.bf16.msra.mxu1 %v811_v0  ;;  %v816_v5 = vld [vmem:[%s203_s8 + $0x18] sm:$0xff]   ;;  %v642_v6 = vld [vmem:[#allocation7] ss:$0 sm:$0xff]  ;;  %s997_s11 = smov 64   ;;  %s998_s18 = smov 32  }
  0x6f   : > { %708 = vmatprep.subr.bf16.mxu0 %v812_v1  ;;  %719 = vmatprep.subr.bf16.mxu1 %v812_v1  ;;  %s699_s26 = sshll.u32 %s981_s15, 11  ;;  %s522_s9 = sshll.u32 %s1229_s22, 4  ;;  %s1314_s9 = int_to_ptr.vmem [resolvable:$true] %s522_s9 }
  0x70   : > { %710 = vmatprep.mubr.msk.bf16.mxu0 %vm288_vm0, %v813_v2  ;;  %714 = vmatprep.mubr.msk.bf16.mxu1 %vm288_vm0, %v814_v3  ;;  %s1312_s4 = scalar_lea.hbm %s1372_s3, %s699_s26  ;;  %s507_s15 = scalar_lea.sflag [#allocation4], %s1216_s28 }
  0x71   : > { %s903_s21 = scalar_lea.vmem %s1314_s9, 2048  ;;  %p1387_p2 = scmp.ne.s32.totalorder %s1383_s27, 0 }
  0x72   : > { %709 = vmatpush3.bf16.msra.mxu0 %v812_v1  ;;  %721 = vmatpush3.bf16.msra.mxu1 %v812_v1  ;;  %p904_p8 = scmp.ne.s32.totalorder %s1314_s9, %s903_s21  ;;  %s999_s30 = smov [#allocation8]  }
  0x73   : > { %s907_s29 = sshll.u32 %s999_s30, 4  ;;  %s908_s29 = int_to_ptr.vmem [resolvable:$false] %s907_s29 }
  0x74   : > { %p905_p1 = pnand %p904_p8, %p1387_p2  ;;  %s909_s5 = scalar_lea.vmem %s908_s29, 4096 }
  0x75   : > { %711 = vmatmul.mubr.msk.bf16.vlgmr.msra.gmra.mrb[0].mxu0 %vm288_vm0, %v815_v4  ;;  %715 = vmatmul.mubr.msk.bf16.vlgmr.msra.gmra.mrb[0].mxu1 %vm288_vm0, %v816_v5  ;;  %p910_p3 = scmp.lt.s32.totalorder %s1314_s9, %s908_s29  ;;  %p911_p5 = scmp.lt.s32.totalorder %s909_s5, %s903_s21 }
  0x76   : > { %p906_p10 = pneg %p905_p1 }
  0x77   : > { %p912_p9 = por %p911_p5, %p910_p3 }
  0x79   : > { %p913_p11 = pnand %p912_p9, %p906_p10 }
 0x148   : > { %v712_v7 = vpop.f32.mrb[0].mxu0  ;;  %v716_v8 = vpop.f32.mrb[0].mxu1 }
 0x149   : > { %v344_v9 = vadd.f32 %v712_v7, %v642_v6  ;;  %v360_v10 = vadd.f32 %v716_v8, %v642_v6  ;;  %v335_v11 = vpop.f32.mrb[1].mxu0  ;;  %v351_v12 = vpop.f32.mrb[1].mxu1 }
 0x14a   : > { %v336_v13 = vadd.f32 %v642_v6, %v335_v11  ;;  %v352_v14 = vadd.f32 %v642_v6, %v351_v12  ;;  %v713_v15 = vpop.f32.mrb[2].mxu0  ;;  %v717_v16 = vpop.f32.mrb[2].mxu1 }
 0x14b   : > { %v693_v17 = vpack.c.bf16 %v344_v9, %v344_v9  ;;  %v697_v18 = vpack.c.bf16 %v360_v10, %v360_v10  ;;  %v347_v19 = vadd.f32 %v713_v15, %v642_v6  ;;  %v363_v20 = vadd.f32 %v717_v16, %v642_v6  ;;  %v338_v21 = vpop.f32.mrb[3].mxu0  ;;  %v354_v22 = vpop.f32.mrb[3].mxu1 }
 0x14c   : > { %v691_v23 = vpack.c.bf16 %v336_v13, %v336_v13  ;;  %v695_v24 = vpack.c.bf16 %v352_v14, %v352_v14  ;;  %v339_v25 = vadd.f32 %v642_v6, %v338_v21  ;;  %v355_v26 = vadd.f32 %v642_v6, %v354_v22 }
 0x14d   : > { %401 = vst.msk [vmem:[%s1229_s22 + $0x8] sm:$0xf] %vm398_vm1, %v693_v17  ;;  %405 = vst.msk [vmem:[%s1229_s22 + $0x18] sm:$0xf] %vm398_vm1, %v697_v18  ;;  %v694_v27 = vpack.c.bf16 %v347_v19, %v347_v19  ;;  %v698_v28 = vpack.c.bf16 %v363_v20, %v363_v20  ;;  %419 = vrot.lane.b32.xlu0 %v697_v18, %s996_s24  ;;  %411 = vrot.lane.b32.xlu1 %v693_v17, %s996_s24 }
 0x14e   : > { %399 = vst.msk [vmem:[%s1229_s22] sm:$0xf] %vm398_vm1, %v691_v23  ;;  %403 = vst.msk [vmem:[%s1229_s22 + $0x10] sm:$0xf] %vm398_vm1, %v695_v24  ;;  %v692_v29 = vpack.c.bf16 %v339_v25, %v339_v25  ;;  %v696_v30 = vpack.c.bf16 %v355_v26, %v355_v26 }
 0x14f   : > { %402 = vst.msk [vmem:[%s1229_s22 + $0xc] sm:$0xf] %vm398_vm1, %v694_v27  ;;  %406 = vst.msk [vmem:[%s1229_s22 + $0x1c] sm:$0xf] %vm398_vm1, %v698_v28 }
 0x150   : > { %400 = vst.msk [vmem:[%s1229_s22 + $0x4] sm:$0xf] %vm398_vm1, %v692_v29  ;;  %404 = vst.msk [vmem:[%s1229_s22 + $0x14] sm:$0xf] %vm398_vm1, %v696_v30 }
 0x151   : > { %444 = vrot.lane.b32.xlu0 %v693_v17, %s997_s11  ;;  %413 = vrot.lane.b32.xlu1 %v694_v27, %s996_s24 }
 0x155   : > { %452 = vrot.lane.b32.xlu0 %v697_v18, %s997_s11  ;;  %421 = vrot.lane.b32.xlu1 %v698_v28, %s996_s24 }
 0x159   : > { %477 = vrot.lane.b32.xlu0 %v693_v17, %s998_s18  ;;  %446 = vrot.lane.b32.xlu1 %v694_v27, %s997_s11 }
 0x15d   : > { %454 = vrot.lane.b32.xlu1 %v698_v28, %s997_s11  ;;  %407 = vrot.lane.b32.xlu0 %v691_v23, %s996_s24 }
 0x161   : > { %479 = vrot.lane.b32.xlu1 %v694_v27, %s998_s18  ;;  %415 = vrot.lane.b32.xlu0 %v695_v24, %s996_s24 }
 0x165   : > { %417 = vrot.lane.b32.xlu1 %v696_v30, %s996_s24  ;;  %440 = vrot.lane.b32.xlu0 %v691_v23, %s997_s11 }
 0x169   : > { %442 = vrot.lane.b32.xlu1 %v692_v29, %s997_s11  ;;  %448 = vrot.lane.b32.xlu0 %v695_v24, %s997_s11 }
 0x16d   : > { %450 = vrot.lane.b32.xlu1 %v696_v30, %s997_s11  ;;  %473 = vrot.lane.b32.xlu0 %v691_v23, %s998_s18 }
 0x171   : > { %475 = vrot.lane.b32.xlu1 %v692_v29, %s998_s18  ;;  %481 = vrot.lane.b32.xlu0 %v695_v24, %s998_s18 }
 0x175   : > { %483 = vrot.lane.b32.xlu1 %v696_v30, %s998_s18  ;;  %409 = vrot.lane.b32.xlu0 %v692_v29, %s996_s24 }
 0x179   : > { %487 = vrot.lane.b32.xlu1 %v698_v28, %s998_s18  ;;  %485 = vrot.lane.b32.xlu0 %v697_v18, %s998_s18 }
 0x1bf   : > { %v420_v31 = vpop.permute.xlu0 %419  ;;  %v412_v32 = vpop.permute.xlu1 %411 }
 0x1c0   : > { %667 = vst.msk [vmem:[%s1229_s22 + $0x38] sm:$0xf] %vm398_vm1, %v420_v31  ;;  %663 = vst.msk [vmem:[%s1229_s22 + $0x28] sm:$0xf] %vm398_vm1, %v412_v32 }
 0x1c3   : > { %v445_v33 = vpop.permute.xlu0 %444  ;;  %v414_v34 = vpop.permute.xlu1 %413 }
 0x1c4   : > { %671 = vst.msk [vmem:[%s1229_s22 + $0x48] sm:$0xf] %vm398_vm1, %v445_v33  ;;  %664 = vst.msk [vmem:[%s1229_s22 + $0x2c] sm:$0xf] %vm398_vm1, %v414_v34 }
 0x1c7   : > { %v453_v35 = vpop.permute.xlu0 %452  ;;  %v422_v36 = vpop.permute.xlu1 %421 }
 0x1c8   : > { %675 = vst.msk [vmem:[%s1229_s22 + $0x58] sm:$0xf] %vm398_vm1, %v453_v35  ;;  %668 = vst.msk [vmem:[%s1229_s22 + $0x3c] sm:$0xf] %vm398_vm1, %v422_v36 }
 0x1cb   : > { %v478_v37 = vpop.permute.xlu0 %477  ;;  %v447_v38 = vpop.permute.xlu1 %446 }
 0x1cc   : > { %679 = vst.msk [vmem:[%s1229_s22 + $0x68] sm:$0xf] %vm398_vm1, %v478_v37  ;;  %672 = vst.msk [vmem:[%s1229_s22 + $0x4c] sm:$0xf] %vm398_vm1, %v447_v38 }
 0x1cf   : > { %v455_v39 = vpop.permute.xlu1 %454  ;;  %v408_v40 = vpop.permute.xlu0 %407 }
 0x1d0   : > { %676 = vst.msk [vmem:[%s1229_s22 + $0x5c] sm:$0xf] %vm398_vm1, %v455_v39  ;;  %661 = vst.msk [vmem:[%s1229_s22 + $0x20] sm:$0xf] %vm398_vm1, %v408_v40 }
 0x1d3   : > { %v480_v41 = vpop.permute.xlu1 %479  ;;  %v416_v42 = vpop.permute.xlu0 %415 }
 0x1d4   : > { %680 = vst.msk [vmem:[%s1229_s22 + $0x6c] sm:$0xf] %vm398_vm1, %v480_v41  ;;  %665 = vst.msk [vmem:[%s1229_s22 + $0x30] sm:$0xf] %vm398_vm1, %v416_v42 }
 0x1d7   : > { %v418_v43 = vpop.permute.xlu1 %417  ;;  %v441_v44 = vpop.permute.xlu0 %440 }
 0x1d8   : > { %666 = vst.msk [vmem:[%s1229_s22 + $0x34] sm:$0xf] %vm398_vm1, %v418_v43  ;;  %669 = vst.msk [vmem:[%s1229_s22 + $0x40] sm:$0xf] %vm398_vm1, %v441_v44 }
 0x1db   : > { %v443_v45 = vpop.permute.xlu1 %442  ;;  %v449_v46 = vpop.permute.xlu0 %448 }
 0x1dc   : > { %670 = vst.msk [vmem:[%s1229_s22 + $0x44] sm:$0xf] %vm398_vm1, %v443_v45  ;;  %673 = vst.msk [vmem:[%s1229_s22 + $0x50] sm:$0xf] %vm398_vm1, %v449_v46 }
 0x1df   : > { %v451_v47 = vpop.permute.xlu1 %450  ;;  %v474_v48 = vpop.permute.xlu0 %473 }
 0x1e0   : > { %674 = vst.msk [vmem:[%s1229_s22 + $0x54] sm:$0xf] %vm398_vm1, %v451_v47  ;;  %677 = vst.msk [vmem:[%s1229_s22 + $0x60] sm:$0xf] %vm398_vm1, %v474_v48 }
 0x1e3   : > { %v476_v49 = vpop.permute.xlu1 %475  ;;  %v482_v50 = vpop.permute.xlu0 %481 }
 0x1e4   : > { %678 = vst.msk [vmem:[%s1229_s22 + $0x64] sm:$0xf] %vm398_vm1, %v476_v49  ;;  %681 = vst.msk [vmem:[%s1229_s22 + $0x70] sm:$0xf] %vm398_vm1, %v482_v50 }
 0x1e7   : > { %v484_v51 = vpop.permute.xlu1 %483  ;;  %v410_v52 = vpop.permute.xlu0 %409 }
 0x1e8   : > { %682 = vst.msk [vmem:[%s1229_s22 + $0x74] sm:$0xf] %vm398_vm1, %v484_v51  ;;  %662 = vst.msk [vmem:[%s1229_s22 + $0x24] sm:$0xf] %vm398_vm1, %v410_v52 }
 0x1eb   : > { %v488_v53 = vpop.permute.xlu1 %487  ;;  %v486_v54 = vpop.permute.xlu0 %485 }
 0x1ec   : > { %684 = vst.msk [vmem:[%s1229_s22 + $0x7c] sm:$0xf] %vm398_vm1, %v488_v53  ;;  %683 = vst.msk [vmem:[%s1229_s22 + $0x78] sm:$0xf] %vm398_vm1, %v486_v54 }
 0x1ed   : > { %916 = shalt.err (!%p913_p11)
}
 0x1ee   : > { %s917_s7 = scalar_lea.hbm %s1312_s4, 2048  ;;  %s921_s22 = scalar_lea.hbm %s1372_s3, 4096 }
 0x1ef   : > { %p918_p0 = scmp.ne.s32.totalorder %s1312_s4, %s917_s7  ;;  %p922_p6 = scmp.lt.u32.totalorder %s1312_s4, %s1372_s3 }
 0x1f0   : > { %p923_p7 = scmp.lt.u32.totalorder %s921_s22, %s917_s7  ;;  %p925_p8 = scmp.lt.u32.totalorder %s917_s7, %s1312_s4 }
 0x1f1   : > { %p919_p4 = pnand %p918_p0, %p1387_p2 }
 0x1f2   : > { %p924_p12 = por %p923_p7, %p922_p6 }
 0x1f3   : > { %p920_p13 = pneg %p919_p4 }
 0x1f4   : > { %p926_p1 = por %p925_p8, %p924_p12 }
 0x1f6   : > { %p927_p10 = pnand %p926_p1, %p920_p13 }
 0x1f8   : > { %930 = shalt.err (!%p927_p10)
}
 0x1f9   : > { %s1000_s26 = smov 4  }
 0x1fa   : > { %732 = dma.vmem_to_hbm [thread:$0]  (%p1387_p2), %s1314_s9, 2048, %s1312_s4, %s507_s15, %s997_s11, %s997_s11, %s1000_s26  }
 0x1fb PF: > { %s537_s10 = sand.u32 1, %s969_s12   ;;  %p1388_p3 = scmp.ne.s32.totalorder %s1380_s23, 0 }
 0x1fc   : > { %p1389_p5 = scmp.ge.s32.totalorder %s989_s17, 2  ;;  %s538_s19 = scalar_lea.sflag [#allocation4], %s537_s10 }
 0x1fe   : > { %p746_p9 = pnand %p1389_p5, %p1388_p3 }
 0x200   : > { %964 = dma.done.wait (!%p746_p9), %s538_s19, 2048  }
 0x201   : > { %966 = vsyncadd (!%p746_p9), %s538_s19, 4294965248  ;;  %s20_s17 = sadd.s32 1, %s989_s17   ;;  %s1390_s12 = smov %s973_s13 }
 0x202   : > { %p17_p11 = scmp.ge.s32.totalorder %s20_s17, 4   ;;  %s1391_s13 = smov %s977_s14 }
 0x203   : > { %s1392_s14 = smov %s1167_s6  ;;  %s1393_s15 = smov %s985_s16 }
 0x204   : > { %s1394_s16 = smov %s1396_s25  ;;  %19 = sbr.rel (!%p17_p11) target bundleno = 7 (0x7), region = 88 }
 0x20b   :  { %543 = vsyncpa [#allocation3], 1 }
 0x20c   :  { %545 = vsyncpa [#allocation3 + $0x1], 1 }
 0x20d   :  { %546 = vsyncpa [#allocation6], 1 }
 0x20e   :  { %547 = vsyncpa [#allocation4], 1 }
 0x20f   :  { %549 = vsyncpa [#allocation4 + $0x1], 1 }

</bundles_post_ra>
